<compile_context>
chip_gen: v5e
topology: v5e:2x2
jax: 0.10.0
libtpu: 0.0.40
codegen_flags: <defaults>
</compile_context>

<pallas_src>
import jax
import jax.numpy as jnp
from jax import lax
from jax.experimental import pallas as pl
from jax.experimental.pallas import tpu as pltpu


def fasttext_kernel(ids_ref, emb_ref, wc_ref, bc_ref, out_ref, acc_ref):
    # ids_ref : (B_pad, S) int32 in SMEM  (scalar-prefetched token ids)
    # emb_ref : (V, E)  f32 in VMEM       (whole embedding table, resident)
    # wc_ref  : (E, Lp) f32 in VMEM       (fused W1@W2 with 1/S folded in)
    # bc_ref  : (1, Lp) f32 in VMEM       (fused bias b1@W2 + b2)
    # out_ref : (b_tile, Lp) f32          (lane-dense output tile)
    # acc_ref : (b_tile, E) f32 scratch   (per-row embedding sums)
    i = pl.program_id(0)
    b_tile, emb_dim = acc_ref.shape
    seq_len = ids_ref.shape[1]

    # In-kernel embedding gather + sum over the sequence axis.
    for r in range(b_tile):  # static unroll; b_tile is small / compile-time
        def body(s, acc):
            tok = ids_ref[i * b_tile + r, s]            # scalar read from SMEM
            return acc + emb_ref[pl.ds(tok, 1), :]      # dynamic row gather (1, E)
        row_sum = lax.fori_loop(0, seq_len, body,
                                jnp.zeros((1, emb_dim), jnp.float32),
                                unroll=True)
        acc_ref[r:r + 1, :] = row_sum

    # Single fused matmul: mean-scale and both linears folded into wc / bc.
    # TODO(synk): cast acc/wc to bf16 for the MXU on v6e/v7x once shapes are real.
    out_ref[...] = (jnp.dot(acc_ref[...], wc_ref[...],
                            preferred_element_type=jnp.float32)
                    + bc_ref[...]).astype(out_ref.dtype)


def fasttext_forward(X, embedding, w1, b1, w2, b2, *, b_tile=None):
    """X: (B, S) int32 token ids. Returns (B, label_num) float32 logits."""
    B, S = X.shape
    V, E = embedding.shape
    L = w2.shape[1]

    if b_tile is None:
        b_tile = 128 if B >= 128 else 8     # sublane-aligned batch tile

    # --- wrapper-side algebraic fusion (tiny, amortized across calls) ---
    wc = (w1 @ w2) / jnp.float32(S)         # (E, L): both linears + 1/S mean
    bc = b1 @ w2 + b2                       # (1, L)

    # Lane-dense output: pad the label dim to a multiple of 128 lanes.
    L_pad = ((L + 127) // 128) * 128
    wc_p = jnp.zeros((E, L_pad), jnp.float32).at[:, :L].set(wc)
    bc_p = jnp.zeros((1, L_pad), jnp.float32).at[:, :L].set(bc)

    # Pad batch to a multiple of the tile (padded rows use token id 0, dropped later).
    B_pad = ((B + b_tile - 1) // b_tile) * b_tile
    ids = jnp.zeros((B_pad, S), jnp.int32).at[:B, :].set(X)

    grid = (pl.cdiv(B_pad, b_tile),)
    out = pl.pallas_call(
        fasttext_kernel,
        out_shape=jax.ShapeDtypeStruct((B_pad, L_pad), jnp.float32),
        grid_spec=pltpu.PrefetchScalarGridSpec(
            num_scalar_prefetch=1,          # ids -> SMEM, passed to index_maps too
            grid=grid,
            in_specs=[
                # whole embedding table resident in VMEM (V*E*4 bytes, tiny here);
                # for large V switch to memory_space=pl.ANY + per-token DMA gather.
                pl.BlockSpec((V, E), lambda i, ids: (0, 0)),
                pl.BlockSpec((E, L_pad), lambda i, ids: (0, 0)),
                pl.BlockSpec((1, L_pad), lambda i, ids: (0, 0)),
            ],
            out_specs=pl.BlockSpec((b_tile, L_pad), lambda i, ids: (i, 0)),
            scratch_shapes=[pltpu.VMEM((b_tile, E), jnp.float32)],
        ),
        compiler_params=pltpu.CompilerParams(
            dimension_semantics=("parallel",),  # batch tiles pipeline / shard across TCs
        ),
    )(ids, embedding, wc_p, bc_p)

    out = out[:B, :L]
    # PyTorch applies .squeeze() after the mean; only observable when B == 1.
    return jnp.squeeze(out) if B == 1 else out


def reference_forward(X, embedding, w1, b1, w2, b2):
    embed_tokens = jnp.take(embedding, X, axis=0)
    mean_emb = jnp.mean(embed_tokens, axis=1)
    hidden = mean_emb @ w1 + b1
    return hidden @ w2 + b2


if __name__ == "__main__":
    # Model hyperparameters (small, consistent with the module).
    word_num = 100
    embedding_size = 32
    hidden_size = 32
    label_num = 8
    batch = 2
    seq_len = 8

    key = jax.random.PRNGKey(0)
    k_emb, k_w1, k_b1, k_w2, k_b2, k_x = jax.random.split(key, 6)

    # Deterministic parameter init (shapes match nn.Embedding / nn.Linear).
    embedding = jax.random.normal(k_emb, (word_num, embedding_size), jnp.float32)
    lim1 = 1.0 / jnp.sqrt(embedding_size)
    w1 = jax.random.uniform(k_w1, (embedding_size, hidden_size), jnp.float32,
                            -lim1, lim1)          # transposed vs. torch (out,in)
    b1 = jax.random.uniform(k_b1, (1, hidden_size), jnp.float32, -lim1, lim1)
    lim2 = 1.0 / jnp.sqrt(hidden_size)
    w2 = jax.random.uniform(k_w2, (hidden_size, label_num), jnp.float32,
                            -lim2, lim2)
    b2 = jax.random.uniform(k_b2, (1, label_num), jnp.float32, -lim2, lim2)

    X = jax.random.randint(k_x, (batch, seq_len), 0, word_num, jnp.int32)

    out = fasttext_forward(X, embedding, w1, b1, w2, b2)
    out = jax.block_until_ready(out)

    ref = reference_forward(X, embedding, w1, b1, w2, b2)
    expected = jnp.squeeze(ref) if batch == 1 else ref
    assert out.shape == expected.shape
    assert jnp.allclose(out, expected, atol=1e-4, rtol=1e-4)
    print("KERNEL_OK")
</pallas_src>

<mosaic_0001>
module attributes {stable_mosaic.version = 11 : i64} {
  func.func @fasttext_kernel(%arg0: i32, %arg1: memref<8x8xi32, #tpu.memory_space<smem>>, %arg2: memref<100x32xf32, #tpu.memory_space<vmem>>, %arg3: memref<32x128xf32, #tpu.memory_space<vmem>>, %arg4: memref<1x128xf32, #tpu.memory_space<vmem>>, %arg5: memref<8x128xf32, #tpu.memory_space<vmem>>, %arg6: memref<8x32xf32, #tpu.memory_space<vmem>>) attributes {dimension_semantics = [#tpu.dimension_semantics<parallel>], iteration_bounds = array<i64: 1>, scalar_prefetch = 1 : i64, scratch_operands = 1 : i64, tpu.core_type = #tpu.core_type<tc>, window_params = [{pipeline_mode = #tpu.pipeline_mode<synchronous>, transform_indices = @transform_0, window_bounds = array<i64: 100, 32>}, {pipeline_mode = #tpu.pipeline_mode<synchronous>, transform_indices = @transform_1, window_bounds = array<i64: 32, 128>}, {pipeline_mode = #tpu.pipeline_mode<synchronous>, transform_indices = @transform_2, window_bounds = array<i64: 1, 128>}, {transform_indices = @transform_3, window_bounds = array<i64: 8, 128>}]} {
    %cst = arith.constant 0.000000e+00 : f32
    %0 = vector.broadcast %cst : f32 to vector<1x32xf32>
    %c0_i32 = arith.constant 0 : i32
    %c8_i32 = arith.constant 8 : i32
    %1 = arith.muli %arg0, %c8_i32 : i32
    %c0_i32_0 = arith.constant 0 : i32
    %2 = arith.addi %1, %c0_i32_0 : i32
    %3 = arith.index_cast %2 : i32 to index
    %4 = arith.index_cast %c0_i32 : i32 to index
    %5 = memref.load %arg1[%3, %4] : memref<8x8xi32, #tpu.memory_space<smem>>
    %6 = arith.index_cast %5 : i32 to index
    %c0 = arith.constant 0 : index
    %7 = vector.load %arg2[%6, %c0] : memref<100x32xf32, #tpu.memory_space<vmem>>, vector<1x32xf32>
    %8 = arith.addf %0, %7 : vector<1x32xf32>
    %c1_i32 = arith.constant 1 : i32
    %c8_i32_1 = arith.constant 8 : i32
    %9 = arith.muli %arg0, %c8_i32_1 : i32
    %c0_i32_2 = arith.constant 0 : i32
    %10 = arith.addi %9, %c0_i32_2 : i32
    %11 = arith.index_cast %10 : i32 to index
    %12 = arith.index_cast %c1_i32 : i32 to index
    %13 = memref.load %arg1[%11, %12] : memref<8x8xi32, #tpu.memory_space<smem>>
    %14 = arith.index_cast %13 : i32 to index
    %c0_3 = arith.constant 0 : index
    %15 = vector.load %arg2[%14, %c0_3] : memref<100x32xf32, #tpu.memory_space<vmem>>, vector<1x32xf32>
    %16 = arith.addf %8, %15 : vector<1x32xf32>
    %c2_i32 = arith.constant 2 : i32
    %c8_i32_4 = arith.constant 8 : i32
    %17 = arith.muli %arg0, %c8_i32_4 : i32
    %c0_i32_5 = arith.constant 0 : i32
    %18 = arith.addi %17, %c0_i32_5 : i32
    %19 = arith.index_cast %18 : i32 to index
    %20 = arith.index_cast %c2_i32 : i32 to index
    %21 = memref.load %arg1[%19, %20] : memref<8x8xi32, #tpu.memory_space<smem>>
    %22 = arith.index_cast %21 : i32 to index
    %c0_6 = arith.constant 0 : index
    %23 = vector.load %arg2[%22, %c0_6] : memref<100x32xf32, #tpu.memory_space<vmem>>, vector<1x32xf32>
    %24 = arith.addf %16, %23 : vector<1x32xf32>
    %c3_i32 = arith.constant 3 : i32
    %c8_i32_7 = arith.constant 8 : i32
    %25 = arith.muli %arg0, %c8_i32_7 : i32
    %c0_i32_8 = arith.constant 0 : i32
    %26 = arith.addi %25, %c0_i32_8 : i32
    %27 = arith.index_cast %26 : i32 to index
    %28 = arith.index_cast %c3_i32 : i32 to index
    %29 = memref.load %arg1[%27, %28] : memref<8x8xi32, #tpu.memory_space<smem>>
    %30 = arith.index_cast %29 : i32 to index
    %c0_9 = arith.constant 0 : index
    %31 = vector.load %arg2[%30, %c0_9] : memref<100x32xf32, #tpu.memory_space<vmem>>, vector<1x32xf32>
    %32 = arith.addf %24, %31 : vector<1x32xf32>
    %c4_i32 = arith.constant 4 : i32
    %c8_i32_10 = arith.constant 8 : i32
    %33 = arith.muli %arg0, %c8_i32_10 : i32
    %c0_i32_11 = arith.constant 0 : i32
    %34 = arith.addi %33, %c0_i32_11 : i32
    %35 = arith.index_cast %34 : i32 to index
    %36 = arith.index_cast %c4_i32 : i32 to index
    %37 = memref.load %arg1[%35, %36] : memref<8x8xi32, #tpu.memory_space<smem>>
    %38 = arith.index_cast %37 : i32 to index
    %c0_12 = arith.constant 0 : index
    %39 = vector.load %arg2[%38, %c0_12] : memref<100x32xf32, #tpu.memory_space<vmem>>, vector<1x32xf32>
    %40 = arith.addf %32, %39 : vector<1x32xf32>
    %c5_i32 = arith.constant 5 : i32
    %c8_i32_13 = arith.constant 8 : i32
    %41 = arith.muli %arg0, %c8_i32_13 : i32
    %c0_i32_14 = arith.constant 0 : i32
    %42 = arith.addi %41, %c0_i32_14 : i32
    %43 = arith.index_cast %42 : i32 to index
    %44 = arith.index_cast %c5_i32 : i32 to index
    %45 = memref.load %arg1[%43, %44] : memref<8x8xi32, #tpu.memory_space<smem>>
    %46 = arith.index_cast %45 : i32 to index
    %c0_15 = arith.constant 0 : index
    %47 = vector.load %arg2[%46, %c0_15] : memref<100x32xf32, #tpu.memory_space<vmem>>, vector<1x32xf32>
    %48 = arith.addf %40, %47 : vector<1x32xf32>
    %c6_i32 = arith.constant 6 : i32
    %c8_i32_16 = arith.constant 8 : i32
    %49 = arith.muli %arg0, %c8_i32_16 : i32
    %c0_i32_17 = arith.constant 0 : i32
    %50 = arith.addi %49, %c0_i32_17 : i32
    %51 = arith.index_cast %50 : i32 to index
    %52 = arith.index_cast %c6_i32 : i32 to index
    %53 = memref.load %arg1[%51, %52] : memref<8x8xi32, #tpu.memory_space<smem>>
    %54 = arith.index_cast %53 : i32 to index
    %c0_18 = arith.constant 0 : index
    %55 = vector.load %arg2[%54, %c0_18] : memref<100x32xf32, #tpu.memory_space<vmem>>, vector<1x32xf32>
    %56 = arith.addf %48, %55 : vector<1x32xf32>
    %c7_i32 = arith.constant 7 : i32
    %c8_i32_19 = arith.constant 8 : i32
    %57 = arith.muli %arg0, %c8_i32_19 : i32
    %c0_i32_20 = arith.constant 0 : i32
    %58 = arith.addi %57, %c0_i32_20 : i32
    %59 = arith.index_cast %58 : i32 to index
    %60 = arith.index_cast %c7_i32 : i32 to index
    %61 = memref.load %arg1[%59, %60] : memref<8x8xi32, #tpu.memory_space<smem>>
    %62 = arith.index_cast %61 : i32 to index
    %c0_21 = arith.constant 0 : index
    %63 = vector.load %arg2[%62, %c0_21] : memref<100x32xf32, #tpu.memory_space<vmem>>, vector<1x32xf32>
    %64 = arith.addf %56, %63 : vector<1x32xf32>
    %c8_i32_22 = arith.constant 8 : i32
    %c0_23 = arith.constant 0 : index
    %c0_24 = arith.constant 0 : index
    %65 = vector.load %arg6[%c0_23, %c0_24] : memref<8x32xf32, #tpu.memory_space<vmem>>, vector<1x32xf32>
    tpu.vector_store %arg6[%c0_23, %c0_24], %64 {strides = array<i32>} : memref<8x32xf32, #tpu.memory_space<vmem>>, vector<1x32xf32>,
    %cst_25 = arith.constant 0.000000e+00 : f32
    %66 = vector.broadcast %cst_25 : f32 to vector<1x32xf32>
    %c0_i32_26 = arith.constant 0 : i32
    %c8_i32_27 = arith.constant 8 : i32
    %67 = arith.muli %arg0, %c8_i32_27 : i32
    %c1_i32_28 = arith.constant 1 : i32
    %68 = arith.addi %67, %c1_i32_28 : i32
    %69 = arith.index_cast %68 : i32 to index
    %70 = arith.index_cast %c0_i32_26 : i32 to index
    %71 = memref.load %arg1[%69, %70] : memref<8x8xi32, #tpu.memory_space<smem>>
    %72 = arith.index_cast %71 : i32 to index
    %c0_29 = arith.constant 0 : index
    %73 = vector.load %arg2[%72, %c0_29] : memref<100x32xf32, #tpu.memory_space<vmem>>, vector<1x32xf32>
    %74 = arith.addf %66, %73 : vector<1x32xf32>
    %c1_i32_30 = arith.constant 1 : i32
    %c8_i32_31 = arith.constant 8 : i32
    %75 = arith.muli %arg0, %c8_i32_31 : i32
    %c1_i32_32 = arith.constant 1 : i32
    %76 = arith.addi %75, %c1_i32_32 : i32
    %77 = arith.index_cast %76 : i32 to index
    %78 = arith.index_cast %c1_i32_30 : i32 to index
    %79 = memref.load %arg1[%77, %78] : memref<8x8xi32, #tpu.memory_space<smem>>
    %80 = arith.index_cast %79 : i32 to index
    %c0_33 = arith.constant 0 : index
    %81 = vector.load %arg2[%80, %c0_33] : memref<100x32xf32, #tpu.memory_space<vmem>>, vector<1x32xf32>
    %82 = arith.addf %74, %81 : vector<1x32xf32>
    %c2_i32_34 = arith.constant 2 : i32
    %c8_i32_35 = arith.constant 8 : i32
    %83 = arith.muli %arg0, %c8_i32_35 : i32
    %c1_i32_36 = arith.constant 1 : i32
    %84 = arith.addi %83, %c1_i32_36 : i32
    %85 = arith.index_cast %84 : i32 to index
    %86 = arith.index_cast %c2_i32_34 : i32 to index
    %87 = memref.load %arg1[%85, %86] : memref<8x8xi32, #tpu.memory_space<smem>>
    %88 = arith.index_cast %87 : i32 to index
    %c0_37 = arith.constant 0 : index
    %89 = vector.load %arg2[%88, %c0_37] : memref<100x32xf32, #tpu.memory_space<vmem>>, vector<1x32xf32>
    %90 = arith.addf %82, %89 : vector<1x32xf32>
    %c3_i32_38 = arith.constant 3 : i32
    %c8_i32_39 = arith.constant 8 : i32
    %91 = arith.muli %arg0, %c8_i32_39 : i32
    %c1_i32_40 = arith.constant 1 : i32
    %92 = arith.addi %91, %c1_i32_40 : i32
    %93 = arith.index_cast %92 : i32 to index
    %94 = arith.index_cast %c3_i32_38 : i32 to index
    %95 = memref.load %arg1[%93, %94] : memref<8x8xi32, #tpu.memory_space<smem>>
    %96 = arith.index_cast %95 : i32 to index
    %c0_41 = arith.constant 0 : index
    %97 = vector.load %arg2[%96, %c0_41] : memref<100x32xf32, #tpu.memory_space<vmem>>, vector<1x32xf32>
    %98 = arith.addf %90, %97 : vector<1x32xf32>
    %c4_i32_42 = arith.constant 4 : i32
    %c8_i32_43 = arith.constant 8 : i32
    %99 = arith.muli %arg0, %c8_i32_43 : i32
    %c1_i32_44 = arith.constant 1 : i32
    %100 = arith.addi %99, %c1_i32_44 : i32
    %101 = arith.index_cast %100 : i32 to index
    %102 = arith.index_cast %c4_i32_42 : i32 to index
    %103 = memref.load %arg1[%101, %102] : memref<8x8xi32, #tpu.memory_space<smem>>
    %104 = arith.index_cast %103 : i32 to index
    %c0_45 = arith.constant 0 : index
    %105 = vector.load %arg2[%104, %c0_45] : memref<100x32xf32, #tpu.memory_space<vmem>>, vector<1x32xf32>
    %106 = arith.addf %98, %105 : vector<1x32xf32>
    %c5_i32_46 = arith.constant 5 : i32
    %c8_i32_47 = arith.constant 8 : i32
    %107 = arith.muli %arg0, %c8_i32_47 : i32
    %c1_i32_48 = arith.constant 1 : i32
    %108 = arith.addi %107, %c1_i32_48 : i32
    %109 = arith.index_cast %108 : i32 to index
    %110 = arith.index_cast %c5_i32_46 : i32 to index
    %111 = memref.load %arg1[%109, %110] : memref<8x8xi32, #tpu.memory_space<smem>>
    %112 = arith.index_cast %111 : i32 to index
    %c0_49 = arith.constant 0 : index
    %113 = vector.load %arg2[%112, %c0_49] : memref<100x32xf32, #tpu.memory_space<vmem>>, vector<1x32xf32>
    %114 = arith.addf %106, %113 : vector<1x32xf32>
    %c6_i32_50 = arith.constant 6 : i32
    %c8_i32_51 = arith.constant 8 : i32
    %115 = arith.muli %arg0, %c8_i32_51 : i32
    %c1_i32_52 = arith.constant 1 : i32
    %116 = arith.addi %115, %c1_i32_52 : i32
    %117 = arith.index_cast %116 : i32 to index
    %118 = arith.index_cast %c6_i32_50 : i32 to index
    %119 = memref.load %arg1[%117, %118] : memref<8x8xi32, #tpu.memory_space<smem>>
    %120 = arith.index_cast %119 : i32 to index
    %c0_53 = arith.constant 0 : index
    %121 = vector.load %arg2[%120, %c0_53] : memref<100x32xf32, #tpu.memory_space<vmem>>, vector<1x32xf32>
    %122 = arith.addf %114, %121 : vector<1x32xf32>
    %c7_i32_54 = arith.constant 7 : i32
    %c8_i32_55 = arith.constant 8 : i32
    %123 = arith.muli %arg0, %c8_i32_55 : i32
    %c1_i32_56 = arith.constant 1 : i32
    %124 = arith.addi %123, %c1_i32_56 : i32
    %125 = arith.index_cast %124 : i32 to index
    %126 = arith.index_cast %c7_i32_54 : i32 to index
    %127 = memref.load %arg1[%125, %126] : memref<8x8xi32, #tpu.memory_space<smem>>
    %128 = arith.index_cast %127 : i32 to index
    %c0_57 = arith.constant 0 : index
    %129 = vector.load %arg2[%128, %c0_57] : memref<100x32xf32, #tpu.memory_space<vmem>>, vector<1x32xf32>
    %130 = arith.addf %122, %129 : vector<1x32xf32>
    %c8_i32_58 = arith.constant 8 : i32
    %c1 = arith.constant 1 : index
    %c0_59 = arith.constant 0 : index
    %131 = vector.load %arg6[%c1, %c0_59] : memref<8x32xf32, #tpu.memory_space<vmem>>, vector<1x32xf32>
    tpu.vector_store %arg6[%c1, %c0_59], %130 {strides = array<i32>} : memref<8x32xf32, #tpu.memory_space<vmem>>, vector<1x32xf32>,
    %cst_60 = arith.constant 0.000000e+00 : f32
    %132 = vector.broadcast %cst_60 : f32 to vector<1x32xf32>
    %c0_i32_61 = arith.constant 0 : i32
    %c8_i32_62 = arith.constant 8 : i32
    %133 = arith.muli %arg0, %c8_i32_62 : i32
    %c2_i32_63 = arith.constant 2 : i32
    %134 = arith.addi %133, %c2_i32_63 : i32
    %135 = arith.index_cast %134 : i32 to index
    %136 = arith.index_cast %c0_i32_61 : i32 to index
    %137 = memref.load %arg1[%135, %136] : memref<8x8xi32, #tpu.memory_space<smem>>
    %138 = arith.index_cast %137 : i32 to index
    %c0_64 = arith.constant 0 : index
    %139 = vector.load %arg2[%138, %c0_64] : memref<100x32xf32, #tpu.memory_space<vmem>>, vector<1x32xf32>
    %140 = arith.addf %132, %139 : vector<1x32xf32>
    %c1_i32_65 = arith.constant 1 : i32
    %c8_i32_66 = arith.constant 8 : i32
    %141 = arith.muli %arg0, %c8_i32_66 : i32
    %c2_i32_67 = arith.constant 2 : i32
    %142 = arith.addi %141, %c2_i32_67 : i32
    %143 = arith.index_cast %142 : i32 to index
    %144 = arith.index_cast %c1_i32_65 : i32 to index
    %145 = memref.load %arg1[%143, %144] : memref<8x8xi32, #tpu.memory_space<smem>>
    %146 = arith.index_cast %145 : i32 to index
    %c0_68 = arith.constant 0 : index
    %147 = vector.load %arg2[%146, %c0_68] : memref<100x32xf32, #tpu.memory_space<vmem>>, vector<1x32xf32>
    %148 = arith.addf %140, %147 : vector<1x32xf32>
    %c2_i32_69 = arith.constant 2 : i32
    %c8_i32_70 = arith.constant 8 : i32
    %149 = arith.muli %arg0, %c8_i32_70 : i32
    %c2_i32_71 = arith.constant 2 : i32
    %150 = arith.addi %149, %c2_i32_71 : i32
    %151 = arith.index_cast %150 : i32 to index
    %152 = arith.index_cast %c2_i32_69 : i32 to index
    %153 = memref.load %arg1[%151, %152] : memref<8x8xi32, #tpu.memory_space<smem>>
    %154 = arith.index_cast %153 : i32 to index
    %c0_72 = arith.constant 0 : index
    %155 = vector.load %arg2[%154, %c0_72] : memref<100x32xf32, #tpu.memory_space<vmem>>, vector<1x32xf32>
    %156 = arith.addf %148, %155 : vector<1x32xf32>
    %c3_i32_73 = arith.constant 3 : i32
    %c8_i32_74 = arith.constant 8 : i32
    %157 = arith.muli %arg0, %c8_i32_74 : i32
    %c2_i32_75 = arith.constant 2 : i32
    %158 = arith.addi %157, %c2_i32_75 : i32
    %159 = arith.index_cast %158 : i32 to index
    %160 = arith.index_cast %c3_i32_73 : i32 to index
    %161 = memref.load %arg1[%159, %160] : memref<8x8xi32, #tpu.memory_space<smem>>
    %162 = arith.index_cast %161 : i32 to index
    %c0_76 = arith.constant 0 : index
    %163 = vector.load %arg2[%162, %c0_76] : memref<100x32xf32, #tpu.memory_space<vmem>>, vector<1x32xf32>
    %164 = arith.addf %156, %163 : vector<1x32xf32>
    %c4_i32_77 = arith.constant 4 : i32
    %c8_i32_78 = arith.constant 8 : i32
    %165 = arith.muli %arg0, %c8_i32_78 : i32
    %c2_i32_79 = arith.constant 2 : i32
    %166 = arith.addi %165, %c2_i32_79 : i32
    %167 = arith.index_cast %166 : i32 to index
    %168 = arith.index_cast %c4_i32_77 : i32 to index
    %169 = memref.load %arg1[%167, %168] : memref<8x8xi32, #tpu.memory_space<smem>>
    %170 = arith.index_cast %169 : i32 to index
    %c0_80 = arith.constant 0 : index
    %171 = vector.load %arg2[%170, %c0_80] : memref<100x32xf32, #tpu.memory_space<vmem>>, vector<1x32xf32>
    %172 = arith.addf %164, %171 : vector<1x32xf32>
    %c5_i32_81 = arith.constant 5 : i32
    %c8_i32_82 = arith.constant 8 : i32
    %173 = arith.muli %arg0, %c8_i32_82 : i32
    %c2_i32_83 = arith.constant 2 : i32
    %174 = arith.addi %173, %c2_i32_83 : i32
    %175 = arith.index_cast %174 : i32 to index
    %176 = arith.index_cast %c5_i32_81 : i32 to index
    %177 = memref.load %arg1[%175, %176] : memref<8x8xi32, #tpu.memory_space<smem>>
    %178 = arith.index_cast %177 : i32 to index
    %c0_84 = arith.constant 0 : index
    %179 = vector.load %arg2[%178, %c0_84] : memref<100x32xf32, #tpu.memory_space<vmem>>, vector<1x32xf32>
    %180 = arith.addf %172, %179 : vector<1x32xf32>
    %c6_i32_85 = arith.constant 6 : i32
    %c8_i32_86 = arith.constant 8 : i32
    %181 = arith.muli %arg0, %c8_i32_86 : i32
    %c2_i32_87 = arith.constant 2 : i32
    %182 = arith.addi %181, %c2_i32_87 : i32
    %183 = arith.index_cast %182 : i32 to index
    %184 = arith.index_cast %c6_i32_85 : i32 to index
    %185 = memref.load %arg1[%183, %184] : memref<8x8xi32, #tpu.memory_space<smem>>
    %186 = arith.index_cast %185 : i32 to index
    %c0_88 = arith.constant 0 : index
    %187 = vector.load %arg2[%186, %c0_88] : memref<100x32xf32, #tpu.memory_space<vmem>>, vector<1x32xf32>
    %188 = arith.addf %180, %187 : vector<1x32xf32>
    %c7_i32_89 = arith.constant 7 : i32
    %c8_i32_90 = arith.constant 8 : i32
    %189 = arith.muli %arg0, %c8_i32_90 : i32
    %c2_i32_91 = arith.constant 2 : i32
    %190 = arith.addi %189, %c2_i32_91 : i32
    %191 = arith.index_cast %190 : i32 to index
    %192 = arith.index_cast %c7_i32_89 : i32 to index
    %193 = memref.load %arg1[%191, %192] : memref<8x8xi32, #tpu.memory_space<smem>>
    %194 = arith.index_cast %193 : i32 to index
    %c0_92 = arith.constant 0 : index
    %195 = vector.load %arg2[%194, %c0_92] : memref<100x32xf32, #tpu.memory_space<vmem>>, vector<1x32xf32>
    %196 = arith.addf %188, %195 : vector<1x32xf32>
    %c8_i32_93 = arith.constant 8 : i32
    %c2 = arith.constant 2 : index
    %c0_94 = arith.constant 0 : index
    %197 = vector.load %arg6[%c2, %c0_94] : memref<8x32xf32, #tpu.memory_space<vmem>>, vector<1x32xf32>
    tpu.vector_store %arg6[%c2, %c0_94], %196 {strides = array<i32>} : memref<8x32xf32, #tpu.memory_space<vmem>>, vector<1x32xf32>,
    %cst_95 = arith.constant 0.000000e+00 : f32
    %198 = vector.broadcast %cst_95 : f32 to vector<1x32xf32>
    %c0_i32_96 = arith.constant 0 : i32
    %c8_i32_97 = arith.constant 8 : i32
    %199 = arith.muli %arg0, %c8_i32_97 : i32
    %c3_i32_98 = arith.constant 3 : i32
    %200 = arith.addi %199, %c3_i32_98 : i32
    %201 = arith.index_cast %200 : i32 to index
    %202 = arith.index_cast %c0_i32_96 : i32 to index
    %203 = memref.load %arg1[%201, %202] : memref<8x8xi32, #tpu.memory_space<smem>>
    %204 = arith.index_cast %203 : i32 to index
    %c0_99 = arith.constant 0 : index
    %205 = vector.load %arg2[%204, %c0_99] : memref<100x32xf32, #tpu.memory_space<vmem>>, vector<1x32xf32>
    %206 = arith.addf %198, %205 : vector<1x32xf32>
    %c1_i32_100 = arith.constant 1 : i32
    %c8_i32_101 = arith.constant 8 : i32
    %207 = arith.muli %arg0, %c8_i32_101 : i32
    %c3_i32_102 = arith.constant 3 : i32
    %208 = arith.addi %207, %c3_i32_102 : i32
    %209 = arith.index_cast %208 : i32 to index
    %210 = arith.index_cast %c1_i32_100 : i32 to index
    %211 = memref.load %arg1[%209, %210] : memref<8x8xi32, #tpu.memory_space<smem>>
    %212 = arith.index_cast %211 : i32 to index
    %c0_103 = arith.constant 0 : index
    %213 = vector.load %arg2[%212, %c0_103] : memref<100x32xf32, #tpu.memory_space<vmem>>, vector<1x32xf32>
    %214 = arith.addf %206, %213 : vector<1x32xf32>
    %c2_i32_104 = arith.constant 2 : i32
    %c8_i32_105 = arith.constant 8 : i32
    %215 = arith.muli %arg0, %c8_i32_105 : i32
    %c3_i32_106 = arith.constant 3 : i32
    %216 = arith.addi %215, %c3_i32_106 : i32
    %217 = arith.index_cast %216 : i32 to index
    %218 = arith.index_cast %c2_i32_104 : i32 to index
    %219 = memref.load %arg1[%217, %218] : memref<8x8xi32, #tpu.memory_space<smem>>
    %220 = arith.index_cast %219 : i32 to index
    %c0_107 = arith.constant 0 : index
    %221 = vector.load %arg2[%220, %c0_107] : memref<100x32xf32, #tpu.memory_space<vmem>>, vector<1x32xf32>
    %222 = arith.addf %214, %221 : vector<1x32xf32>
    %c3_i32_108 = arith.constant 3 : i32
    %c8_i32_109 = arith.constant 8 : i32
    %223 = arith.muli %arg0, %c8_i32_109 : i32
    %c3_i32_110 = arith.constant 3 : i32
    %224 = arith.addi %223, %c3_i32_110 : i32
    %225 = arith.index_cast %224 : i32 to index
    %226 = arith.index_cast %c3_i32_108 : i32 to index
    %227 = memref.load %arg1[%225, %226] : memref<8x8xi32, #tpu.memory_space<smem>>
    %228 = arith.index_cast %227 : i32 to index
    %c0_111 = arith.constant 0 : index
    %229 = vector.load %arg2[%228, %c0_111] : memref<100x32xf32, #tpu.memory_space<vmem>>, vector<1x32xf32>
    %230 = arith.addf %222, %229 : vector<1x32xf32>
    %c4_i32_112 = arith.constant 4 : i32
    %c8_i32_113 = arith.constant 8 : i32
    %231 = arith.muli %arg0, %c8_i32_113 : i32
    %c3_i32_114 = arith.constant 3 : i32
    %232 = arith.addi %231, %c3_i32_114 : i32
    %233 = arith.index_cast %232 : i32 to index
    %234 = arith.index_cast %c4_i32_112 : i32 to index
    %235 = memref.load %arg1[%233, %234] : memref<8x8xi32, #tpu.memory_space<smem>>
    %236 = arith.index_cast %235 : i32 to index
    %c0_115 = arith.constant 0 : index
    %237 = vector.load %arg2[%236, %c0_115] : memref<100x32xf32, #tpu.memory_space<vmem>>, vector<1x32xf32>
    %238 = arith.addf %230, %237 : vector<1x32xf32>
    %c5_i32_116 = arith.constant 5 : i32
    %c8_i32_117 = arith.constant 8 : i32
    %239 = arith.muli %arg0, %c8_i32_117 : i32
    %c3_i32_118 = arith.constant 3 : i32
    %240 = arith.addi %239, %c3_i32_118 : i32
    %241 = arith.index_cast %240 : i32 to index
    %242 = arith.index_cast %c5_i32_116 : i32 to index
    %243 = memref.load %arg1[%241, %242] : memref<8x8xi32, #tpu.memory_space<smem>>
    %244 = arith.index_cast %243 : i32 to index
    %c0_119 = arith.constant 0 : index
    %245 = vector.load %arg2[%244, %c0_119] : memref<100x32xf32, #tpu.memory_space<vmem>>, vector<1x32xf32>
    %246 = arith.addf %238, %245 : vector<1x32xf32>
    %c6_i32_120 = arith.constant 6 : i32
    %c8_i32_121 = arith.constant 8 : i32
    %247 = arith.muli %arg0, %c8_i32_121 : i32
    %c3_i32_122 = arith.constant 3 : i32
    %248 = arith.addi %247, %c3_i32_122 : i32
    %249 = arith.index_cast %248 : i32 to index
    %250 = arith.index_cast %c6_i32_120 : i32 to index
    %251 = memref.load %arg1[%249, %250] : memref<8x8xi32, #tpu.memory_space<smem>>
    %252 = arith.index_cast %251 : i32 to index
    %c0_123 = arith.constant 0 : index
    %253 = vector.load %arg2[%252, %c0_123] : memref<100x32xf32, #tpu.memory_space<vmem>>, vector<1x32xf32>
    %254 = arith.addf %246, %253 : vector<1x32xf32>
    %c7_i32_124 = arith.constant 7 : i32
    %c8_i32_125 = arith.constant 8 : i32
    %255 = arith.muli %arg0, %c8_i32_125 : i32
    %c3_i32_126 = arith.constant 3 : i32
    %256 = arith.addi %255, %c3_i32_126 : i32
    %257 = arith.index_cast %256 : i32 to index
    %258 = arith.index_cast %c7_i32_124 : i32 to index
    %259 = memref.load %arg1[%257, %258] : memref<8x8xi32, #tpu.memory_space<smem>>
    %260 = arith.index_cast %259 : i32 to index
    %c0_127 = arith.constant 0 : index
    %261 = vector.load %arg2[%260, %c0_127] : memref<100x32xf32, #tpu.memory_space<vmem>>, vector<1x32xf32>
    %262 = arith.addf %254, %261 : vector<1x32xf32>
    %c8_i32_128 = arith.constant 8 : i32
    %c3 = arith.constant 3 : index
    %c0_129 = arith.constant 0 : index
    %263 = vector.load %arg6[%c3, %c0_129] : memref<8x32xf32, #tpu.memory_space<vmem>>, vector<1x32xf32>
    tpu.vector_store %arg6[%c3, %c0_129], %262 {strides = array<i32>} : memref<8x32xf32, #tpu.memory_space<vmem>>, vector<1x32xf32>,
    %cst_130 = arith.constant 0.000000e+00 : f32
    %264 = vector.broadcast %cst_130 : f32 to vector<1x32xf32>
    %c0_i32_131 = arith.constant 0 : i32
    %c8_i32_132 = arith.constant 8 : i32
    %265 = arith.muli %arg0, %c8_i32_132 : i32
    %c4_i32_133 = arith.constant 4 : i32
    %266 = arith.addi %265, %c4_i32_133 : i32
    %267 = arith.index_cast %266 : i32 to index
    %268 = arith.index_cast %c0_i32_131 : i32 to index
    %269 = memref.load %arg1[%267, %268] : memref<8x8xi32, #tpu.memory_space<smem>>
    %270 = arith.index_cast %269 : i32 to index
    %c0_134 = arith.constant 0 : index
    %271 = vector.load %arg2[%270, %c0_134] : memref<100x32xf32, #tpu.memory_space<vmem>>, vector<1x32xf32>
    %272 = arith.addf %264, %271 : vector<1x32xf32>
    %c1_i32_135 = arith.constant 1 : i32
    %c8_i32_136 = arith.constant 8 : i32
    %273 = arith.muli %arg0, %c8_i32_136 : i32
    %c4_i32_137 = arith.constant 4 : i32
    %274 = arith.addi %273, %c4_i32_137 : i32
    %275 = arith.index_cast %274 : i32 to index
    %276 = arith.index_cast %c1_i32_135 : i32 to index
    %277 = memref.load %arg1[%275, %276] : memref<8x8xi32, #tpu.memory_space<smem>>
    %278 = arith.index_cast %277 : i32 to index
    %c0_138 = arith.constant 0 : index
    %279 = vector.load %arg2[%278, %c0_138] : memref<100x32xf32, #tpu.memory_space<vmem>>, vector<1x32xf32>
    %280 = arith.addf %272, %279 : vector<1x32xf32>
    %c2_i32_139 = arith.constant 2 : i32
    %c8_i32_140 = arith.constant 8 : i32
    %281 = arith.muli %arg0, %c8_i32_140 : i32
    %c4_i32_141 = arith.constant 4 : i32
    %282 = arith.addi %281, %c4_i32_141 : i32
    %283 = arith.index_cast %282 : i32 to index
    %284 = arith.index_cast %c2_i32_139 : i32 to index
    %285 = memref.load %arg1[%283, %284] : memref<8x8xi32, #tpu.memory_space<smem>>
    %286 = arith.index_cast %285 : i32 to index
    %c0_142 = arith.constant 0 : index
    %287 = vector.load %arg2[%286, %c0_142] : memref<100x32xf32, #tpu.memory_space<vmem>>, vector<1x32xf32>
    %288 = arith.addf %280, %287 : vector<1x32xf32>
    %c3_i32_143 = arith.constant 3 : i32
    %c8_i32_144 = arith.constant 8 : i32
    %289 = arith.muli %arg0, %c8_i32_144 : i32
    %c4_i32_145 = arith.constant 4 : i32
    %290 = arith.addi %289, %c4_i32_145 : i32
    %291 = arith.index_cast %290 : i32 to index
    %292 = arith.index_cast %c3_i32_143 : i32 to index
    %293 = memref.load %arg1[%291, %292] : memref<8x8xi32, #tpu.memory_space<smem>>
    %294 = arith.index_cast %293 : i32 to index
    %c0_146 = arith.constant 0 : index
    %295 = vector.load %arg2[%294, %c0_146] : memref<100x32xf32, #tpu.memory_space<vmem>>, vector<1x32xf32>
    %296 = arith.addf %288, %295 : vector<1x32xf32>
    %c4_i32_147 = arith.constant 4 : i32
    %c8_i32_148 = arith.constant 8 : i32
    %297 = arith.muli %arg0, %c8_i32_148 : i32
    %c4_i32_149 = arith.constant 4 : i32
    %298 = arith.addi %297, %c4_i32_149 : i32
    %299 = arith.index_cast %298 : i32 to index
    %300 = arith.index_cast %c4_i32_147 : i32 to index
    %301 = memref.load %arg1[%299, %300] : memref<8x8xi32, #tpu.memory_space<smem>>
    %302 = arith.index_cast %301 : i32 to index
    %c0_150 = arith.constant 0 : index
    %303 = vector.load %arg2[%302, %c0_150] : memref<100x32xf32, #tpu.memory_space<vmem>>, vector<1x32xf32>
    %304 = arith.addf %296, %303 : vector<1x32xf32>
    %c5_i32_151 = arith.constant 5 : i32
    %c8_i32_152 = arith.constant 8 : i32
    %305 = arith.muli %arg0, %c8_i32_152 : i32
    %c4_i32_153 = arith.constant 4 : i32
    %306 = arith.addi %305, %c4_i32_153 : i32
    %307 = arith.index_cast %306 : i32 to index
    %308 = arith.index_cast %c5_i32_151 : i32 to index
    %309 = memref.load %arg1[%307, %308] : memref<8x8xi32, #tpu.memory_space<smem>>
    %310 = arith.index_cast %309 : i32 to index
    %c0_154 = arith.constant 0 : index
    %311 = vector.load %arg2[%310, %c0_154] : memref<100x32xf32, #tpu.memory_space<vmem>>, vector<1x32xf32>
    %312 = arith.addf %304, %311 : vector<1x32xf32>
    %c6_i32_155 = arith.constant 6 : i32
    %c8_i32_156 = arith.constant 8 : i32
    %313 = arith.muli %arg0, %c8_i32_156 : i32
    %c4_i32_157 = arith.constant 4 : i32
    %314 = arith.addi %313, %c4_i32_157 : i32
    %315 = arith.index_cast %314 : i32 to index
    %316 = arith.index_cast %c6_i32_155 : i32 to index
    %317 = memref.load %arg1[%315, %316] : memref<8x8xi32, #tpu.memory_space<smem>>
    %318 = arith.index_cast %317 : i32 to index
    %c0_158 = arith.constant 0 : index
    %319 = vector.load %arg2[%318, %c0_158] : memref<100x32xf32, #tpu.memory_space<vmem>>, vector<1x32xf32>
    %320 = arith.addf %312, %319 : vector<1x32xf32>
    %c7_i32_159 = arith.constant 7 : i32
    %c8_i32_160 = arith.constant 8 : i32
    %321 = arith.muli %arg0, %c8_i32_160 : i32
    %c4_i32_161 = arith.constant 4 : i32
    %322 = arith.addi %321, %c4_i32_161 : i32
    %323 = arith.index_cast %322 : i32 to index
    %324 = arith.index_cast %c7_i32_159 : i32 to index
    %325 = memref.load %arg1[%323, %324] : memref<8x8xi32, #tpu.memory_space<smem>>
    %326 = arith.index_cast %325 : i32 to index
    %c0_162 = arith.constant 0 : index
    %327 = vector.load %arg2[%326, %c0_162] : memref<100x32xf32, #tpu.memory_space<vmem>>, vector<1x32xf32>
    %328 = arith.addf %320, %327 : vector<1x32xf32>
    %c8_i32_163 = arith.constant 8 : i32
    %c4 = arith.constant 4 : index
    %c0_164 = arith.constant 0 : index
    %329 = vector.load %arg6[%c4, %c0_164] : memref<8x32xf32, #tpu.memory_space<vmem>>, vector<1x32xf32>
    tpu.vector_store %arg6[%c4, %c0_164], %328 {strides = array<i32>} : memref<8x32xf32, #tpu.memory_space<vmem>>, vector<1x32xf32>,
    %cst_165 = arith.constant 0.000000e+00 : f32
    %330 = vector.broadcast %cst_165 : f32 to vector<1x32xf32>
    %c0_i32_166 = arith.constant 0 : i32
    %c8_i32_167 = arith.constant 8 : i32
    %331 = arith.muli %arg0, %c8_i32_167 : i32
    %c5_i32_168 = arith.constant 5 : i32
    %332 = arith.addi %331, %c5_i32_168 : i32
    %333 = arith.index_cast %332 : i32 to index
    %334 = arith.index_cast %c0_i32_166 : i32 to index
    %335 = memref.load %arg1[%333, %334] : memref<8x8xi32, #tpu.memory_space<smem>>
    %336 = arith.index_cast %335 : i32 to index
    %c0_169 = arith.constant 0 : index
    %337 = vector.load %arg2[%336, %c0_169] : memref<100x32xf32, #tpu.memory_space<vmem>>, vector<1x32xf32>
    %338 = arith.addf %330, %337 : vector<1x32xf32>
    %c1_i32_170 = arith.constant 1 : i32
    %c8_i32_171 = arith.constant 8 : i32
    %339 = arith.muli %arg0, %c8_i32_171 : i32
    %c5_i32_172 = arith.constant 5 : i32
    %340 = arith.addi %339, %c5_i32_172 : i32
    %341 = arith.index_cast %340 : i32 to index
    %342 = arith.index_cast %c1_i32_170 : i32 to index
    %343 = memref.load %arg1[%341, %342] : memref<8x8xi32, #tpu.memory_space<smem>>
    %344 = arith.index_cast %343 : i32 to index
    %c0_173 = arith.constant 0 : index
    %345 = vector.load %arg2[%344, %c0_173] : memref<100x32xf32, #tpu.memory_space<vmem>>, vector<1x32xf32>
    %346 = arith.addf %338, %345 : vector<1x32xf32>
    %c2_i32_174 = arith.constant 2 : i32
    %c8_i32_175 = arith.constant 8 : i32
    %347 = arith.muli %arg0, %c8_i32_175 : i32
    %c5_i32_176 = arith.constant 5 : i32
    %348 = arith.addi %347, %c5_i32_176 : i32
    %349 = arith.index_cast %348 : i32 to index
    %350 = arith.index_cast %c2_i32_174 : i32 to index
    %351 = memref.load %arg1[%349, %350] : memref<8x8xi32, #tpu.memory_space<smem>>
    %352 = arith.index_cast %351 : i32 to index
    %c0_177 = arith.constant 0 : index
    %353 = vector.load %arg2[%352, %c0_177] : memref<100x32xf32, #tpu.memory_space<vmem>>, vector<1x32xf32>
    %354 = arith.addf %346, %353 : vector<1x32xf32>
    %c3_i32_178 = arith.constant 3 : i32
    %c8_i32_179 = arith.constant 8 : i32
    %355 = arith.muli %arg0, %c8_i32_179 : i32
    %c5_i32_180 = arith.constant 5 : i32
    %356 = arith.addi %355, %c5_i32_180 : i32
    %357 = arith.index_cast %356 : i32 to index
    %358 = arith.index_cast %c3_i32_178 : i32 to index
    %359 = memref.load %arg1[%357, %358] : memref<8x8xi32, #tpu.memory_space<smem>>
    %360 = arith.index_cast %359 : i32 to index
    %c0_181 = arith.constant 0 : index
    %361 = vector.load %arg2[%360, %c0_181] : memref<100x32xf32, #tpu.memory_space<vmem>>, vector<1x32xf32>
    %362 = arith.addf %354, %361 : vector<1x32xf32>
    %c4_i32_182 = arith.constant 4 : i32
    %c8_i32_183 = arith.constant 8 : i32
    %363 = arith.muli %arg0, %c8_i32_183 : i32
    %c5_i32_184 = arith.constant 5 : i32
    %364 = arith.addi %363, %c5_i32_184 : i32
    %365 = arith.index_cast %364 : i32 to index
    %366 = arith.index_cast %c4_i32_182 : i32 to index
    %367 = memref.load %arg1[%365, %366] : memref<8x8xi32, #tpu.memory_space<smem>>
    %368 = arith.index_cast %367 : i32 to index
    %c0_185 = arith.constant 0 : index
    %369 = vector.load %arg2[%368, %c0_185] : memref<100x32xf32, #tpu.memory_space<vmem>>, vector<1x32xf32>
    %370 = arith.addf %362, %369 : vector<1x32xf32>
    %c5_i32_186 = arith.constant 5 : i32
    %c8_i32_187 = arith.constant 8 : i32
    %371 = arith.muli %arg0, %c8_i32_187 : i32
    %c5_i32_188 = arith.constant 5 : i32
    %372 = arith.addi %371, %c5_i32_188 : i32
    %373 = arith.index_cast %372 : i32 to index
    %374 = arith.index_cast %c5_i32_186 : i32 to index
    %375 = memref.load %arg1[%373, %374] : memref<8x8xi32, #tpu.memory_space<smem>>
    %376 = arith.index_cast %375 : i32 to index
    %c0_189 = arith.constant 0 : index
    %377 = vector.load %arg2[%376, %c0_189] : memref<100x32xf32, #tpu.memory_space<vmem>>, vector<1x32xf32>
    %378 = arith.addf %370, %377 : vector<1x32xf32>
    %c6_i32_190 = arith.constant 6 : i32
    %c8_i32_191 = arith.constant 8 : i32
    %379 = arith.muli %arg0, %c8_i32_191 : i32
    %c5_i32_192 = arith.constant 5 : i32
    %380 = arith.addi %379, %c5_i32_192 : i32
    %381 = arith.index_cast %380 : i32 to index
    %382 = arith.index_cast %c6_i32_190 : i32 to index
    %383 = memref.load %arg1[%381, %382] : memref<8x8xi32, #tpu.memory_space<smem>>
    %384 = arith.index_cast %383 : i32 to index
    %c0_193 = arith.constant 0 : index
    %385 = vector.load %arg2[%384, %c0_193] : memref<100x32xf32, #tpu.memory_space<vmem>>, vector<1x32xf32>
    %386 = arith.addf %378, %385 : vector<1x32xf32>
    %c7_i32_194 = arith.constant 7 : i32
    %c8_i32_195 = arith.constant 8 : i32
    %387 = arith.muli %arg0, %c8_i32_195 : i32
    %c5_i32_196 = arith.constant 5 : i32
    %388 = arith.addi %387, %c5_i32_196 : i32
    %389 = arith.index_cast %388 : i32 to index
    %390 = arith.index_cast %c7_i32_194 : i32 to index
    %391 = memref.load %arg1[%389, %390] : memref<8x8xi32, #tpu.memory_space<smem>>
    %392 = arith.index_cast %391 : i32 to index
    %c0_197 = arith.constant 0 : index
    %393 = vector.load %arg2[%392, %c0_197] : memref<100x32xf32, #tpu.memory_space<vmem>>, vector<1x32xf32>
    %394 = arith.addf %386, %393 : vector<1x32xf32>
    %c8_i32_198 = arith.constant 8 : i32
    %c5 = arith.constant 5 : index
    %c0_199 = arith.constant 0 : index
    %395 = vector.load %arg6[%c5, %c0_199] : memref<8x32xf32, #tpu.memory_space<vmem>>, vector<1x32xf32>
    tpu.vector_store %arg6[%c5, %c0_199], %394 {strides = array<i32>} : memref<8x32xf32, #tpu.memory_space<vmem>>, vector<1x32xf32>,
    %cst_200 = arith.constant 0.000000e+00 : f32
    %396 = vector.broadcast %cst_200 : f32 to vector<1x32xf32>
    %c0_i32_201 = arith.constant 0 : i32
    %c8_i32_202 = arith.constant 8 : i32
    %397 = arith.muli %arg0, %c8_i32_202 : i32
    %c6_i32_203 = arith.constant 6 : i32
    %398 = arith.addi %397, %c6_i32_203 : i32
    %399 = arith.index_cast %398 : i32 to index
    %400 = arith.index_cast %c0_i32_201 : i32 to index
    %401 = memref.load %arg1[%399, %400] : memref<8x8xi32, #tpu.memory_space<smem>>
    %402 = arith.index_cast %401 : i32 to index
    %c0_204 = arith.constant 0 : index
    %403 = vector.load %arg2[%402, %c0_204] : memref<100x32xf32, #tpu.memory_space<vmem>>, vector<1x32xf32>
    %404 = arith.addf %396, %403 : vector<1x32xf32>
    %c1_i32_205 = arith.constant 1 : i32
    %c8_i32_206 = arith.constant 8 : i32
    %405 = arith.muli %arg0, %c8_i32_206 : i32
    %c6_i32_207 = arith.constant 6 : i32
    %406 = arith.addi %405, %c6_i32_207 : i32
    %407 = arith.index_cast %406 : i32 to index
    %408 = arith.index_cast %c1_i32_205 : i32 to index
    %409 = memref.load %arg1[%407, %408] : memref<8x8xi32, #tpu.memory_space<smem>>
    %410 = arith.index_cast %409 : i32 to index
    %c0_208 = arith.constant 0 : index
    %411 = vector.load %arg2[%410, %c0_208] : memref<100x32xf32, #tpu.memory_space<vmem>>, vector<1x32xf32>
    %412 = arith.addf %404, %411 : vector<1x32xf32>
    %c2_i32_209 = arith.constant 2 : i32
    %c8_i32_210 = arith.constant 8 : i32
    %413 = arith.muli %arg0, %c8_i32_210 : i32
    %c6_i32_211 = arith.constant 6 : i32
    %414 = arith.addi %413, %c6_i32_211 : i32
    %415 = arith.index_cast %414 : i32 to index
    %416 = arith.index_cast %c2_i32_209 : i32 to index
    %417 = memref.load %arg1[%415, %416] : memref<8x8xi32, #tpu.memory_space<smem>>
    %418 = arith.index_cast %417 : i32 to index
    %c0_212 = arith.constant 0 : index
    %419 = vector.load %arg2[%418, %c0_212] : memref<100x32xf32, #tpu.memory_space<vmem>>, vector<1x32xf32>
    %420 = arith.addf %412, %419 : vector<1x32xf32>
    %c3_i32_213 = arith.constant 3 : i32
    %c8_i32_214 = arith.constant 8 : i32
    %421 = arith.muli %arg0, %c8_i32_214 : i32
    %c6_i32_215 = arith.constant 6 : i32
    %422 = arith.addi %421, %c6_i32_215 : i32
    %423 = arith.index_cast %422 : i32 to index
    %424 = arith.index_cast %c3_i32_213 : i32 to index
    %425 = memref.load %arg1[%423, %424] : memref<8x8xi32, #tpu.memory_space<smem>>
    %426 = arith.index_cast %425 : i32 to index
    %c0_216 = arith.constant 0 : index
    %427 = vector.load %arg2[%426, %c0_216] : memref<100x32xf32, #tpu.memory_space<vmem>>, vector<1x32xf32>
    %428 = arith.addf %420, %427 : vector<1x32xf32>
    %c4_i32_217 = arith.constant 4 : i32
    %c8_i32_218 = arith.constant 8 : i32
    %429 = arith.muli %arg0, %c8_i32_218 : i32
    %c6_i32_219 = arith.constant 6 : i32
    %430 = arith.addi %429, %c6_i32_219 : i32
    %431 = arith.index_cast %430 : i32 to index
    %432 = arith.index_cast %c4_i32_217 : i32 to index
    %433 = memref.load %arg1[%431, %432] : memref<8x8xi32, #tpu.memory_space<smem>>
    %434 = arith.index_cast %433 : i32 to index
    %c0_220 = arith.constant 0 : index
    %435 = vector.load %arg2[%434, %c0_220] : memref<100x32xf32, #tpu.memory_space<vmem>>, vector<1x32xf32>
    %436 = arith.addf %428, %435 : vector<1x32xf32>
    %c5_i32_221 = arith.constant 5 : i32
    %c8_i32_222 = arith.constant 8 : i32
    %437 = arith.muli %arg0, %c8_i32_222 : i32
    %c6_i32_223 = arith.constant 6 : i32
    %438 = arith.addi %437, %c6_i32_223 : i32
    %439 = arith.index_cast %438 : i32 to index
    %440 = arith.index_cast %c5_i32_221 : i32 to index
    %441 = memref.load %arg1[%439, %440] : memref<8x8xi32, #tpu.memory_space<smem>>
    %442 = arith.index_cast %441 : i32 to index
    %c0_224 = arith.constant 0 : index
    %443 = vector.load %arg2[%442, %c0_224] : memref<100x32xf32, #tpu.memory_space<vmem>>, vector<1x32xf32>
    %444 = arith.addf %436, %443 : vector<1x32xf32>
    %c6_i32_225 = arith.constant 6 : i32
    %c8_i32_226 = arith.constant 8 : i32
    %445 = arith.muli %arg0, %c8_i32_226 : i32
    %c6_i32_227 = arith.constant 6 : i32
    %446 = arith.addi %445, %c6_i32_227 : i32
    %447 = arith.index_cast %446 : i32 to index
    %448 = arith.index_cast %c6_i32_225 : i32 to index
    %449 = memref.load %arg1[%447, %448] : memref<8x8xi32, #tpu.memory_space<smem>>
    %450 = arith.index_cast %449 : i32 to index
    %c0_228 = arith.constant 0 : index
    %451 = vector.load %arg2[%450, %c0_228] : memref<100x32xf32, #tpu.memory_space<vmem>>, vector<1x32xf32>
    %452 = arith.addf %444, %451 : vector<1x32xf32>
    %c7_i32_229 = arith.constant 7 : i32
    %c8_i32_230 = arith.constant 8 : i32
    %453 = arith.muli %arg0, %c8_i32_230 : i32
    %c6_i32_231 = arith.constant 6 : i32
    %454 = arith.addi %453, %c6_i32_231 : i32
    %455 = arith.index_cast %454 : i32 to index
    %456 = arith.index_cast %c7_i32_229 : i32 to index
    %457 = memref.load %arg1[%455, %456] : memref<8x8xi32, #tpu.memory_space<smem>>
    %458 = arith.index_cast %457 : i32 to index
    %c0_232 = arith.constant 0 : index
    %459 = vector.load %arg2[%458, %c0_232] : memref<100x32xf32, #tpu.memory_space<vmem>>, vector<1x32xf32>
    %460 = arith.addf %452, %459 : vector<1x32xf32>
    %c8_i32_233 = arith.constant 8 : i32
    %c6 = arith.constant 6 : index
    %c0_234 = arith.constant 0 : index
    %461 = vector.load %arg6[%c6, %c0_234] : memref<8x32xf32, #tpu.memory_space<vmem>>, vector<1x32xf32>
    tpu.vector_store %arg6[%c6, %c0_234], %460 {strides = array<i32>} : memref<8x32xf32, #tpu.memory_space<vmem>>, vector<1x32xf32>,
    %cst_235 = arith.constant 0.000000e+00 : f32
    %462 = vector.broadcast %cst_235 : f32 to vector<1x32xf32>
    %c0_i32_236 = arith.constant 0 : i32
    %c8_i32_237 = arith.constant 8 : i32
    %463 = arith.muli %arg0, %c8_i32_237 : i32
    %c7_i32_238 = arith.constant 7 : i32
    %464 = arith.addi %463, %c7_i32_238 : i32
    %465 = arith.index_cast %464 : i32 to index
    %466 = arith.index_cast %c0_i32_236 : i32 to index
    %467 = memref.load %arg1[%465, %466] : memref<8x8xi32, #tpu.memory_space<smem>>
    %468 = arith.index_cast %467 : i32 to index
    %c0_239 = arith.constant 0 : index
    %469 = vector.load %arg2[%468, %c0_239] : memref<100x32xf32, #tpu.memory_space<vmem>>, vector<1x32xf32>
    %470 = arith.addf %462, %469 : vector<1x32xf32>
    %c1_i32_240 = arith.constant 1 : i32
    %c8_i32_241 = arith.constant 8 : i32
    %471 = arith.muli %arg0, %c8_i32_241 : i32
    %c7_i32_242 = arith.constant 7 : i32
    %472 = arith.addi %471, %c7_i32_242 : i32
    %473 = arith.index_cast %472 : i32 to index
    %474 = arith.index_cast %c1_i32_240 : i32 to index
    %475 = memref.load %arg1[%473, %474] : memref<8x8xi32, #tpu.memory_space<smem>>
    %476 = arith.index_cast %475 : i32 to index
    %c0_243 = arith.constant 0 : index
    %477 = vector.load %arg2[%476, %c0_243] : memref<100x32xf32, #tpu.memory_space<vmem>>, vector<1x32xf32>
    %478 = arith.addf %470, %477 : vector<1x32xf32>
    %c2_i32_244 = arith.constant 2 : i32
    %c8_i32_245 = arith.constant 8 : i32
    %479 = arith.muli %arg0, %c8_i32_245 : i32
    %c7_i32_246 = arith.constant 7 : i32
    %480 = arith.addi %479, %c7_i32_246 : i32
    %481 = arith.index_cast %480 : i32 to index
    %482 = arith.index_cast %c2_i32_244 : i32 to index
    %483 = memref.load %arg1[%481, %482] : memref<8x8xi32, #tpu.memory_space<smem>>
    %484 = arith.index_cast %483 : i32 to index
    %c0_247 = arith.constant 0 : index
    %485 = vector.load %arg2[%484, %c0_247] : memref<100x32xf32, #tpu.memory_space<vmem>>, vector<1x32xf32>
    %486 = arith.addf %478, %485 : vector<1x32xf32>
    %c3_i32_248 = arith.constant 3 : i32
    %c8_i32_249 = arith.constant 8 : i32
    %487 = arith.muli %arg0, %c8_i32_249 : i32
    %c7_i32_250 = arith.constant 7 : i32
    %488 = arith.addi %487, %c7_i32_250 : i32
    %489 = arith.index_cast %488 : i32 to index
    %490 = arith.index_cast %c3_i32_248 : i32 to index
    %491 = memref.load %arg1[%489, %490] : memref<8x8xi32, #tpu.memory_space<smem>>
    %492 = arith.index_cast %491 : i32 to index
    %c0_251 = arith.constant 0 : index
    %493 = vector.load %arg2[%492, %c0_251] : memref<100x32xf32, #tpu.memory_space<vmem>>, vector<1x32xf32>
    %494 = arith.addf %486, %493 : vector<1x32xf32>
    %c4_i32_252 = arith.constant 4 : i32
    %c8_i32_253 = arith.constant 8 : i32
    %495 = arith.muli %arg0, %c8_i32_253 : i32
    %c7_i32_254 = arith.constant 7 : i32
    %496 = arith.addi %495, %c7_i32_254 : i32
    %497 = arith.index_cast %496 : i32 to index
    %498 = arith.index_cast %c4_i32_252 : i32 to index
    %499 = memref.load %arg1[%497, %498] : memref<8x8xi32, #tpu.memory_space<smem>>
    %500 = arith.index_cast %499 : i32 to index
    %c0_255 = arith.constant 0 : index
    %501 = vector.load %arg2[%500, %c0_255] : memref<100x32xf32, #tpu.memory_space<vmem>>, vector<1x32xf32>
    %502 = arith.addf %494, %501 : vector<1x32xf32>
    %c5_i32_256 = arith.constant 5 : i32
    %c8_i32_257 = arith.constant 8 : i32
    %503 = arith.muli %arg0, %c8_i32_257 : i32
    %c7_i32_258 = arith.constant 7 : i32
    %504 = arith.addi %503, %c7_i32_258 : i32
    %505 = arith.index_cast %504 : i32 to index
    %506 = arith.index_cast %c5_i32_256 : i32 to index
    %507 = memref.load %arg1[%505, %506] : memref<8x8xi32, #tpu.memory_space<smem>>
    %508 = arith.index_cast %507 : i32 to index
    %c0_259 = arith.constant 0 : index
    %509 = vector.load %arg2[%508, %c0_259] : memref<100x32xf32, #tpu.memory_space<vmem>>, vector<1x32xf32>
    %510 = arith.addf %502, %509 : vector<1x32xf32>
    %c6_i32_260 = arith.constant 6 : i32
    %c8_i32_261 = arith.constant 8 : i32
    %511 = arith.muli %arg0, %c8_i32_261 : i32
    %c7_i32_262 = arith.constant 7 : i32
    %512 = arith.addi %511, %c7_i32_262 : i32
    %513 = arith.index_cast %512 : i32 to index
    %514 = arith.index_cast %c6_i32_260 : i32 to index
    %515 = memref.load %arg1[%513, %514] : memref<8x8xi32, #tpu.memory_space<smem>>
    %516 = arith.index_cast %515 : i32 to index
    %c0_263 = arith.constant 0 : index
    %517 = vector.load %arg2[%516, %c0_263] : memref<100x32xf32, #tpu.memory_space<vmem>>, vector<1x32xf32>
    %518 = arith.addf %510, %517 : vector<1x32xf32>
    %c7_i32_264 = arith.constant 7 : i32
    %c8_i32_265 = arith.constant 8 : i32
    %519 = arith.muli %arg0, %c8_i32_265 : i32
    %c7_i32_266 = arith.constant 7 : i32
    %520 = arith.addi %519, %c7_i32_266 : i32
    %521 = arith.index_cast %520 : i32 to index
    %522 = arith.index_cast %c7_i32_264 : i32 to index
    %523 = memref.load %arg1[%521, %522] : memref<8x8xi32, #tpu.memory_space<smem>>
    %524 = arith.index_cast %523 : i32 to index
    %c0_267 = arith.constant 0 : index
    %525 = vector.load %arg2[%524, %c0_267] : memref<100x32xf32, #tpu.memory_space<vmem>>, vector<1x32xf32>
    %526 = arith.addf %518, %525 : vector<1x32xf32>
    %c8_i32_268 = arith.constant 8 : i32
    %c7 = arith.constant 7 : index
    %c0_269 = arith.constant 0 : index
    %527 = vector.load %arg6[%c7, %c0_269] : memref<8x32xf32, #tpu.memory_space<vmem>>, vector<1x32xf32>
    tpu.vector_store %arg6[%c7, %c0_269], %526 {strides = array<i32>} : memref<8x32xf32, #tpu.memory_space<vmem>>, vector<1x32xf32>,
    %c0_270 = arith.constant 0 : index
    %c0_271 = arith.constant 0 : index
    %528 = vector.load %arg6[%c0_270, %c0_271] : memref<8x32xf32, #tpu.memory_space<vmem>>, vector<8x32xf32>
    %c0_272 = arith.constant 0 : index
    %c0_273 = arith.constant 0 : index
    %529 = vector.load %arg3[%c0_272, %c0_273] : memref<32x128xf32, #tpu.memory_space<vmem>>, vector<32x128xf32>
    %cst_274 = arith.constant dense<0.000000e+00> : vector<8x128xf32>
    %530 = tpu.matmul %528, %529, %cst_274 {dimension_numbers = #tpu.dot_dimension_numbers<[1], [0], [0], [1], [0, 0, 1, 1], [], []>} : vector<8x32xf32>, vector<32x128xf32>, vector<8x128xf32> -> vector<8x128xf32>
    %c0_275 = arith.constant 0 : index
    %c0_276 = arith.constant 0 : index
    %531 = vector.load %arg4[%c0_275, %c0_276] : memref<1x128xf32, #tpu.memory_space<vmem>>, vector<1x128xf32>
    %532 = vector.broadcast %531 : vector<1x128xf32> to vector<8x128xf32>
    %533 = arith.addf %530, %532 : vector<8x128xf32>
    %c0_277 = arith.constant 0 : index
    %c0_278 = arith.constant 0 : index
    %534 = vector.load %arg5[%c0_277, %c0_278] : memref<8x128xf32, #tpu.memory_space<vmem>>, vector<8x128xf32>
    tpu.vector_store %arg5[%c0_277, %c0_278], %533 {strides = array<i32>} : memref<8x128xf32, #tpu.memory_space<vmem>>, vector<8x128xf32>,
    return
  }
  func.func @transform_0(%arg0: i32, %arg1: memref<8x8xi32, #tpu.memory_space<smem>>) -> (i32, i32) {
    %c0_i32 = arith.constant 0 : i32
    %c0_i32_0 = arith.constant 0 : i32
    %c0_i32_1 = arith.constant 0 : i32
    return %c0_i32, %c0_i32_0 : i32, i32
  }
  func.func @transform_1(%arg0: i32, %arg1: memref<8x8xi32, #tpu.memory_space<smem>>) -> (i32, i32) {
    %c0_i32 = arith.constant 0 : i32
    %c0_i32_0 = arith.constant 0 : i32
    %c0_i32_1 = arith.constant 0 : i32
    return %c0_i32, %c0_i32_0 : i32, i32
  }
  func.func @transform_2(%arg0: i32, %arg1: memref<8x8xi32, #tpu.memory_space<smem>>) -> (i32, i32) {
    %c0_i32 = arith.constant 0 : i32
    %c0_i32_0 = arith.constant 0 : i32
    %c0_i32_1 = arith.constant 0 : i32
    return %c0_i32, %c0_i32_0 : i32, i32
  }
  func.func @transform_3(%arg0: i32, %arg1: memref<8x8xi32, #tpu.memory_space<smem>>) -> (i32, i32) {
    %c0_i32 = arith.constant 0 : i32
    %c0_i32_0 = arith.constant 0 : i32
    return %arg0, %c0_i32 : i32, i32
  }
}

</mosaic_0001>

<bundles_post_ra>
// kernel: tpu_custom_call.1
= control target key start
LH: loop header
LB: loop body
LE: loop exit
PB: predicated region body
PF: predicated region fallthrough
CT: control target
= control target key end

     0   :  { %s582_s18 = smov [#allocation4]   ;;  %s908_s0 = inlined_call_operand.vmem [shape: s32[8,8], index: 0, kind: input, shape index: {}]   ;;  %s909_s1 = inlined_call_operand.vmem [shape: f32[100,32], index: 1, kind: input, shape index: {}]   ;;  %s910_s2 = inlined_call_operand.vmem [shape: f32[32,128], index: 2, kind: input, shape index: {}]   ;;  %s911_s3 = inlined_call_operand.vmem [shape: f32[1,128], index: 3, kind: input, shape index: {}]   ;;  %s912_s4 = inlined_call_operand.hbm [shape: f32[8,128], index: 4, kind: output, shape index: {}]  }
   0x1   :  { %s10_s17 = sshll.u32 %s908_s0, 4  ;;  %s11_s17 = int_to_ptr.vmem [resolvable:$true] %s10_s17 }
   0x2   :  { %13 = dma.vmem_to_smem %s11_s17, 128, %s582_s18, [#allocation3] }
   0x3   :  { %578 = dma.done.wait [#allocation3], 128 }
   0x4   :  { %579 = vsyncadd [#allocation3], 4294967168 }
   0x5   :  { %16 = sfence }
   0x6   :  { %v365_v0 = vld [vmem:[%s910_s2 + $0x18] sm:$0xff]  ;;  %v364_v1 = vld [vmem:[%s910_s2 + $0x10] sm:$0xff]  ;;  %s26_s23 = sld [smem:[#allocation4]]  ;;  %v363_v2 = vld [vmem:[%s910_s2 + $0x8] sm:$0xff] }
   0x7   :  { %386 = vmatpush.msra.mxu0 %v365_v0  ;;  %s475_s24 = sld [smem:[#allocation4 + $0x1]] }
   0x8   :  { %s476_s0 = sld [smem:[#allocation4 + $0x2]] }
   0x9   :  { %17 = vsyncpa [#allocation6], 0  ;;  %387 = vmatpush.msra.mxu0 %v364_v1  ;;  %s477_s27 = sld [smem:[#allocation4 + $0x3]]  ;;  %v362_v3 = vld [vmem:[%s910_s2] sm:$0xff]  ;;  %vm65_vm0 = vcmask 253952   ;;  %vm370_vm1 = vcmask 261120  }
   0xa   :  { %s478_s30 = sld [smem:[#allocation4 + $0x4]] }
   0xb   :  { %388 = vmatpush.msra.mxu0 %v363_v2  ;;  %s479_s5 = sld [smem:[#allocation4 + $0x5]] }
   0xc   :  { %s27_s8 = scalar_lea.vmem %s909_s1, %s26_s23  ;;  %s627_s9 = sld [smem:[#allocation4 + $0x6]] }
   0xd   :  { %389 = vmatpush.msra.mxu0 %v362_v3  ;;  %v28_v4 = vld [vmem:[%s27_s8] sm:$0x1]  ;;  %s32_s12 = scalar_lea.vmem %s909_s1, %s475_s24  ;;  %s632_s13 = sld [smem:[#allocation4 + $0x7]] }
   0xe   :  { %v33_v5 = vld [vmem:[%s32_s12] sm:$0x1]  ;;  %s37_s15 = scalar_lea.vmem %s909_s1, %s476_s0  ;;  %s482_s16 = sld [smem:[#allocation4 + $0x80]] }
   0xf   :  { %v34_v6 = vadd.f32 %v33_v5, %v28_v4  ;;  %v38_v7 = vld [vmem:[%s37_s15] sm:$0x1]  ;;  %s42_s19 = scalar_lea.vmem %s909_s1, %s477_s27  ;;  %s483_s20 = sld [smem:[#allocation4 + $0x81]] }
  0x10   :  { %v43_v8 = vld [vmem:[%s42_s19] sm:$0x1]  ;;  %s47_s23 = scalar_lea.vmem %s909_s1, %s478_s30  ;;  %s484_s24 = sld [smem:[#allocation4 + $0x82]] }
  0x11   :  { %v39_v9 = vadd.f32 %v38_v7, %v34_v6  ;;  %s52_s0 = scalar_lea.vmem %s909_s1, %s479_s5  ;;  %s485_s28 = sld [smem:[#allocation4 + $0x83]]  ;;  %v48_v10 = vld [vmem:[%s47_s23] sm:$0x1] }
  0x12   :  { %s57_s7 = scalar_lea.vmem %s909_s1, %s627_s9  ;;  %s650_s8 = sld [smem:[#allocation4 + $0x84]]  ;;  %v53_v12 = vld [vmem:[%s52_s0] sm:$0x1] }
  0x13   :  { %v44_v11 = vadd.f32 %v43_v8, %v39_v9  ;;  %s62_s11 = scalar_lea.vmem %s909_s1, %s632_s13  ;;  %s656_s30 = sld [smem:[#allocation4 + $0x85]]  ;;  %v58_v15 = vld [vmem:[%s57_s7] sm:$0x1] }
  0x14   :  { %s70_s5 = scalar_lea.vmem %s909_s1, %s482_s16  ;;  %s661_s14 = sld [smem:[#allocation4 + $0x86]]  ;;  %v63_v20 = vld [vmem:[%s62_s11] sm:$0x1] }
  0x15   :  { %v49_v13 = vadd.f32 %v48_v10, %v44_v11  ;;  %v71_v14 = vld [vmem:[%s70_s5] sm:$0x1]  ;;  %s75_s17 = scalar_lea.vmem %s909_s1, %s483_s20  ;;  %s666_s18 = sld [smem:[#allocation4 + $0x87]] }
  0x16   :  { %v76_v16 = vld [vmem:[%s75_s17] sm:$0x1]  ;;  %s80_s21 = scalar_lea.vmem %s909_s1, %s484_s24  ;;  %s490_s22 = sld [smem:[#allocation4 + $0x100]] }
  0x17   :  { %v54_v17 = vadd.f32 %v53_v12, %v49_v13  ;;  %v77_v18 = vadd.f32 %v76_v16, %v71_v14  ;;  %v81_v19 = vld [vmem:[%s80_s21] sm:$0x1]  ;;  %s85_s25 = scalar_lea.vmem %s909_s1, %s485_s28  ;;  %s491_s20 = sld [smem:[#allocation4 + $0x101]] }
  0x18   :  { %v86_v21 = vld [vmem:[%s85_s25] sm:$0x1]  ;;  %s90_s29 = scalar_lea.vmem %s909_s1, %s650_s8  ;;  %s492_s6 = sld [smem:[#allocation4 + $0x102]] }
  0x19   :  { %v59_v22 = vadd.f32 %v58_v15, %v54_v17  ;;  %v82_v23 = vadd.f32 %v81_v19, %v77_v18  ;;  %s95_s27 = scalar_lea.vmem %s909_s1, %s656_s30  ;;  %s493_s10 = sld [smem:[#allocation4 + $0x103]]  ;;  %v91_v24 = vld [vmem:[%s90_s29] sm:$0x1] }
  0x1a   :  { %s100_s2 = scalar_lea.vmem %s909_s1, %s661_s14  ;;  %s686_s11 = sld [smem:[#allocation4 + $0x104]]  ;;  %v96_v27 = vld [vmem:[%s95_s27] sm:$0x1] }
  0x1b   :  { %v64_v25 = vadd.f32 %v63_v20, %v59_v22  ;;  %v87_v26 = vadd.f32 %v86_v21, %v82_v23  ;;  %s105_s9 = scalar_lea.vmem %s909_s1, %s666_s18  ;;  %s692_s15 = sld [smem:[#allocation4 + $0x105]]  ;;  %v101_v30 = vld [vmem:[%s100_s2] sm:$0x1] }
  0x1c   :  { %s112_s13 = scalar_lea.vmem %s909_s1, %s490_s22  ;;  %s697_s19 = sld [smem:[#allocation4 + $0x106]]  ;;  %v106_v35 = vld [vmem:[%s105_s9] sm:$0x1] }
  0x1d   :  { %66 = vst.msk [vmem:[#allocation2] sm:$0x1] %vm65_vm0, %v64_v25  ;;  %v92_v28 = vadd.f32 %v91_v24, %v87_v26  ;;  %v113_v29 = vld [vmem:[%s112_s13] sm:$0x1]  ;;  %s117_s16 = scalar_lea.vmem %s909_s1, %s491_s20  ;;  %s703_s23 = sld [smem:[#allocation4 + $0x107]] }
  0x1e   :  { %v118_v31 = vld [vmem:[%s117_s16] sm:$0x1]  ;;  %s122_s22 = scalar_lea.vmem %s909_s1, %s492_s6  ;;  %s498_s26 = sld [smem:[#allocation4 + $0x180]] }
  0x1f   :  { %v97_v32 = vadd.f32 %v96_v27, %v92_v28  ;;  %v119_v33 = vadd.f32 %v118_v31, %v113_v29  ;;  %v123_v34 = vld [vmem:[%s122_s22] sm:$0x1]  ;;  %s127_s24 = scalar_lea.vmem %s909_s1, %s493_s10  ;;  %s499_s20 = sld [smem:[#allocation4 + $0x181]] }
  0x20   :  { %v128_v36 = vld [vmem:[%s127_s24] sm:$0x1]  ;;  %s132_s12 = scalar_lea.vmem %s909_s1, %s686_s11  ;;  %s500_s28 = sld [smem:[#allocation4 + $0x182]] }
  0x21   :  { %v102_v37 = vadd.f32 %v101_v30, %v97_v32  ;;  %v124_v38 = vadd.f32 %v123_v34, %v119_v33  ;;  %s137_s5 = scalar_lea.vmem %s909_s1, %s692_s15  ;;  %s501_s8 = sld [smem:[#allocation4 + $0x183]]  ;;  %v133_v39 = vld [vmem:[%s132_s12] sm:$0x1] }
  0x22   :  { %s142_s10 = scalar_lea.vmem %s909_s1, %s697_s19  ;;  %s723_s13 = sld [smem:[#allocation4 + $0x184]]  ;;  %v138_v42 = vld [vmem:[%s137_s5] sm:$0x1] }
  0x23   :  { %v107_v40 = vadd.f32 %v106_v35, %v102_v37  ;;  %v129_v41 = vadd.f32 %v128_v36, %v124_v38  ;;  %s147_s11 = scalar_lea.vmem %s909_s1, %s703_s23  ;;  %s729_s21 = sld [smem:[#allocation4 + $0x185]]  ;;  %v143_v45 = vld [vmem:[%s142_s10] sm:$0x1] }
  0x24   :  { %s154_s15 = scalar_lea.vmem %s909_s1, %s498_s26  ;;  %s734_s25 = sld [smem:[#allocation4 + $0x186]]  ;;  %v148_v50 = vld [vmem:[%s147_s11] sm:$0x1] }
  0x25   :  { %108 = vst.msk [vmem:[#allocation2 + $0x1] sm:$0x1] %vm65_vm0, %v107_v40  ;;  %v134_v43 = vadd.f32 %v133_v39, %v129_v41  ;;  %v155_v44 = vld [vmem:[%s154_s15] sm:$0x1]  ;;  %s159_s0 = scalar_lea.vmem %s909_s1, %s499_s20  ;;  %s740_s29 = sld [smem:[#allocation4 + $0x187]] }
  0x26   :  { %v160_v46 = vld [vmem:[%s159_s0] sm:$0x1]  ;;  %s164_s26 = scalar_lea.vmem %s909_s1, %s500_s28  ;;  %s506_s7 = sld [smem:[#allocation4 + $0x200]] }
  0x27   :  { %v139_v47 = vadd.f32 %v138_v42, %v134_v43  ;;  %v161_v48 = vadd.f32 %v160_v46, %v155_v44  ;;  %v165_v49 = vld [vmem:[%s164_s26] sm:$0x1]  ;;  %s169_s6 = scalar_lea.vmem %s909_s1, %s501_s8  ;;  %s507_s20 = sld [smem:[#allocation4 + $0x201]] }
  0x28   :  { %v170_v51 = vld [vmem:[%s169_s6] sm:$0x1]  ;;  %s174_s17 = scalar_lea.vmem %s909_s1, %s723_s13  ;;  %s508_s30 = sld [smem:[#allocation4 + $0x202]] }
  0x29   :  { %v144_v52 = vadd.f32 %v143_v45, %v139_v47  ;;  %v166_v53 = vadd.f32 %v165_v49, %v161_v48  ;;  %s179_s9 = scalar_lea.vmem %s909_s1, %s729_s21  ;;  %s509_s14 = sld [smem:[#allocation4 + $0x203]]  ;;  %v175_v54 = vld [vmem:[%s174_s17] sm:$0x1] }
  0x2a   :  { %s184_s8 = scalar_lea.vmem %s909_s1, %s734_s25  ;;  %s760_s15 = sld [smem:[#allocation4 + $0x204]]  ;;  %v180_v57 = vld [vmem:[%s179_s9] sm:$0x1] }
  0x2b   :  { %v149_v55 = vadd.f32 %v148_v50, %v144_v52  ;;  %v171_v56 = vadd.f32 %v170_v51, %v166_v53  ;;  %s189_s13 = scalar_lea.vmem %s909_s1, %s740_s29  ;;  %s766_s22 = sld [smem:[#allocation4 + $0x205]]  ;;  %v185_v60 = vld [vmem:[%s184_s8] sm:$0x1] }
  0x2c   :  { %s196_s21 = scalar_lea.vmem %s909_s1, %s506_s7  ;;  %s771_s24 = sld [smem:[#allocation4 + $0x206]]  ;;  %v190_v1 = vld [vmem:[%s189_s13] sm:$0x1] }
  0x2d   :  { %150 = vst.msk [vmem:[#allocation2 + $0x2] sm:$0x1] %vm65_vm0, %v149_v55  ;;  %v176_v58 = vadd.f32 %v175_v54, %v171_v56  ;;  %v197_v59 = vld [vmem:[%s196_s21] sm:$0x1]  ;;  %s201_s27 = scalar_lea.vmem %s909_s1, %s507_s20  ;;  %s777_s12 = sld [smem:[#allocation4 + $0x207]] }
  0x2e   :  { %v202_v61 = vld [vmem:[%s201_s27] sm:$0x1]  ;;  %s206_s7 = scalar_lea.vmem %s909_s1, %s508_s30  ;;  %s514_s2 = sld [smem:[#allocation4 + $0x280]] }
  0x2f   :  { %v181_v62 = vadd.f32 %v180_v57, %v176_v58  ;;  %v203_v63 = vadd.f32 %v202_v61, %v197_v59  ;;  %v207_v0 = vld [vmem:[%s206_s7] sm:$0x1]  ;;  %s211_s28 = scalar_lea.vmem %s909_s1, %s509_s14  ;;  %s515_s20 = sld [smem:[#allocation4 + $0x281]] }
  0x30   :  { %v212_v2 = vld [vmem:[%s211_s28] sm:$0x1]  ;;  %s216_s16 = scalar_lea.vmem %s909_s1, %s760_s15  ;;  %s516_s18 = sld [smem:[#allocation4 + $0x282]] }
  0x31   :  { %v186_v3 = vadd.f32 %v185_v60, %v181_v62  ;;  %v208_v4 = vadd.f32 %v207_v0, %v203_v63  ;;  %s221_s11 = scalar_lea.vmem %s909_s1, %s766_s22  ;;  %s517_s19 = sld [smem:[#allocation4 + $0x283]]  ;;  %v217_v5 = vld [vmem:[%s216_s16] sm:$0x1] }
  0x32   :  { %s226_s14 = scalar_lea.vmem %s909_s1, %s771_s24  ;;  %s797_s21 = sld [smem:[#allocation4 + $0x284]]  ;;  %v222_v8 = vld [vmem:[%s221_s11] sm:$0x1] }
  0x33   :  { %v191_v6 = vadd.f32 %v190_v1, %v186_v3  ;;  %v213_v7 = vadd.f32 %v212_v2, %v208_v4  ;;  %s231_s15 = scalar_lea.vmem %s909_s1, %s777_s12  ;;  %s803_s26 = sld [smem:[#allocation4 + $0x285]]  ;;  %v227_v11 = vld [vmem:[%s226_s14] sm:$0x1] }
  0x34   :  { %s238_s22 = scalar_lea.vmem %s909_s1, %s514_s2  ;;  %s808_s6 = sld [smem:[#allocation4 + $0x286]]  ;;  %v232_v16 = vld [vmem:[%s231_s15] sm:$0x1] }
  0x35   :  { %192 = vst.msk [vmem:[#allocation2 + $0x3] sm:$0x1] %vm65_vm0, %v191_v6  ;;  %v218_v9 = vadd.f32 %v217_v5, %v213_v7  ;;  %v239_v10 = vld [vmem:[%s238_s22] sm:$0x1]  ;;  %s243_s5 = scalar_lea.vmem %s909_s1, %s515_s20  ;;  %s814_s17 = sld [smem:[#allocation4 + $0x287]] }
  0x36   :  { %v244_v12 = vld [vmem:[%s243_s5] sm:$0x1]  ;;  %s248_s2 = scalar_lea.vmem %s909_s1, %s516_s18  ;;  %s522_s10 = sld [smem:[#allocation4 + $0x300]] }
  0x37   :  { %v223_v13 = vadd.f32 %v222_v8, %v218_v9  ;;  %v245_v14 = vadd.f32 %v244_v12, %v239_v10  ;;  %v249_v15 = vld [vmem:[%s248_s2] sm:$0x1]  ;;  %s253_s30 = scalar_lea.vmem %s909_s1, %s517_s19  ;;  %s523_s20 = sld [smem:[#allocation4 + $0x301]] }
  0x38   :  { %v254_v17 = vld [vmem:[%s253_s30] sm:$0x1]  ;;  %s258_s0 = scalar_lea.vmem %s909_s1, %s797_s21  ;;  %s524_s23 = sld [smem:[#allocation4 + $0x302]] }
  0x39   :  { %v228_v18 = vadd.f32 %v227_v11, %v223_v13  ;;  %v250_v19 = vadd.f32 %v249_v15, %v245_v14  ;;  %s263_s13 = scalar_lea.vmem %s909_s1, %s803_s26  ;;  %s525_s25 = sld [smem:[#allocation4 + $0x303]]  ;;  %v259_v20 = vld [vmem:[%s258_s0] sm:$0x1] }
  0x3a   :  { %s268_s19 = scalar_lea.vmem %s909_s1, %s808_s6  ;;  %s834_s22 = sld [smem:[#allocation4 + $0x304]]  ;;  %v264_v23 = vld [vmem:[%s263_s13] sm:$0x1] }
  0x3b   :  { %v233_v21 = vadd.f32 %v232_v16, %v228_v18  ;;  %v255_v22 = vadd.f32 %v254_v17, %v250_v19  ;;  %s273_s21 = scalar_lea.vmem %s909_s1, %s814_s17  ;;  %s840_s7 = sld [smem:[#allocation4 + $0x305]]  ;;  %v269_v26 = vld [vmem:[%s268_s19] sm:$0x1] }
  0x3c   :  { %s280_s26 = scalar_lea.vmem %s909_s1, %s522_s10  ;;  %s845_s28 = sld [smem:[#allocation4 + $0x306]]  ;;  %v274_v31 = vld [vmem:[%s273_s21] sm:$0x1] }
  0x3d   :  { %234 = vst.msk [vmem:[#allocation2 + $0x4] sm:$0x1] %vm65_vm0, %v233_v21  ;;  %v260_v24 = vadd.f32 %v259_v20, %v255_v22  ;;  %v281_v25 = vld [vmem:[%s280_s26] sm:$0x1]  ;;  %s285_s9 = scalar_lea.vmem %s909_s1, %s523_s20  ;;  %s851_s16 = sld [smem:[#allocation4 + $0x307]] }
  0x3e   :  { %v286_v27 = vld [vmem:[%s285_s9] sm:$0x1]  ;;  %s290_s10 = scalar_lea.vmem %s909_s1, %s524_s23  ;;  %s530_s8 = sld [smem:[#allocation4 + $0x380]] }
  0x3f   :  { %v265_v28 = vadd.f32 %v264_v23, %v260_v24  ;;  %v287_v29 = vadd.f32 %v286_v27, %v281_v25  ;;  %v291_v30 = vld [vmem:[%s290_s10] sm:$0x1]  ;;  %s295_s18 = scalar_lea.vmem %s909_s1, %s525_s25  ;;  %s531_s20 = sld [smem:[#allocation4 + $0x381]] }
  0x40   :  { %v296_v32 = vld [vmem:[%s295_s18] sm:$0x1]  ;;  %s300_s27 = scalar_lea.vmem %s909_s1, %s834_s22  ;;  %s532_s29 = sld [smem:[#allocation4 + $0x382]] }
  0x41   :  { %v270_v33 = vadd.f32 %v269_v26, %v265_v28  ;;  %v292_v34 = vadd.f32 %v291_v30, %v287_v29  ;;  %s305_s15 = scalar_lea.vmem %s909_s1, %s840_s7  ;;  %s533_s24 = sld [smem:[#allocation4 + $0x383]]  ;;  %v301_v35 = vld [vmem:[%s300_s27] sm:$0x1] }
  0x42   :  { %s310_s25 = scalar_lea.vmem %s909_s1, %s845_s28  ;;  %s534_s26 = sld [smem:[#allocation4 + $0x384]]  ;;  %v306_v38 = vld [vmem:[%s305_s15] sm:$0x1] }
  0x43   :  { %v275_v36 = vadd.f32 %v274_v31, %v270_v33  ;;  %v297_v37 = vadd.f32 %v296_v32, %v292_v34  ;;  %s315_s22 = scalar_lea.vmem %s909_s1, %s851_s16  ;;  %s535_s2 = sld [smem:[#allocation4 + $0x385]]  ;;  %v311_v41 = vld [vmem:[%s310_s25] sm:$0x1] }
  0x44   :  { %s322_s30 = scalar_lea.vmem %s909_s1, %s530_s8  ;;  %s536_s7 = sld [smem:[#allocation4 + $0x386]]  ;;  %v316_v46 = vld [vmem:[%s315_s22] sm:$0x1] }
  0x45   :  { %276 = vst.msk [vmem:[#allocation2 + $0x5] sm:$0x1] %vm65_vm0, %v275_v36  ;;  %v302_v39 = vadd.f32 %v301_v35, %v297_v37  ;;  %v323_v40 = vld [vmem:[%s322_s30] sm:$0x1]  ;;  %s327_s11 = scalar_lea.vmem %s909_s1, %s531_s20  ;;  %s537_s0 = sld [smem:[#allocation4 + $0x387]] }
  0x46   :  { %v328_v42 = vld [vmem:[%s327_s11] sm:$0x1]  ;;  %s332_s14 = scalar_lea.vmem %s909_s1, %s532_s29  ;;  %s583_s9 = smov [#allocation5]  }
  0x47   :  { %v307_v43 = vadd.f32 %v306_v38, %v302_v39  ;;  %v329_v44 = vadd.f32 %v328_v42, %v323_v40  ;;  %v333_v45 = vld [vmem:[%s332_s14] sm:$0x1]  ;;  %s337_s27 = scalar_lea.vmem %s909_s1, %s533_s24  ;;  %s400_s17 = sshll.u32 %s583_s9, 4  ;;  %s401_s17 = int_to_ptr.vmem [resolvable:$true] %s400_s17 }
  0x48   :  { %v338_v47 = vld [vmem:[%s337_s27] sm:$0x1]  ;;  %s342_s20 = scalar_lea.vmem %s909_s1, %s534_s26 }
  0x49   :  { %v312_v48 = vadd.f32 %v311_v41, %v307_v43  ;;  %v334_v49 = vadd.f32 %v333_v45, %v329_v44  ;;  %s347_s12 = scalar_lea.vmem %s909_s1, %s535_s2  ;;  %v343_v50 = vld [vmem:[%s342_s20] sm:$0x1] }
  0x4a   :  { %s352_s21 = scalar_lea.vmem %s909_s1, %s536_s7  ;;  %v348_v53 = vld [vmem:[%s347_s12] sm:$0x1] }
  0x4b   :  { %v317_v51 = vadd.f32 %v316_v46, %v312_v48  ;;  %v339_v52 = vadd.f32 %v338_v47, %v334_v49  ;;  %s357_s26 = scalar_lea.vmem %s909_s1, %s537_s0  ;;  %v353_v55 = vld [vmem:[%s352_s21] sm:$0x1]  ;;  %s402_s1 = sshll.u32 %s912_s4, 4  ;;  %s403_s1 = int_to_ptr.hbm [resolvable:$true] %s402_s1 }
  0x4c   :  { %v358_v57 = vld [vmem:[%s357_s26] sm:$0x1] }
  0x4d   :  { %318 = vst.msk [vmem:[#allocation2 + $0x6] sm:$0x1] %vm65_vm0, %v317_v51  ;;  %v344_v54 = vadd.f32 %v343_v50, %v339_v52  ;;  %v541_v61 = vld [vmem:[%s911_s3] ss:$0 sm:$0xff] }
  0x4f   :  { %v349_v56 = vadd.f32 %v348_v53, %v344_v54 }
  0x51   :  { %v354_v58 = vadd.f32 %v353_v55, %v349_v56 }
  0x53   :  { %v359_v59 = vadd.f32 %v358_v57, %v354_v58 }
  0x55   :  { %360 = vst.msk [vmem:[#allocation2 + $0x7] sm:$0x1] %vm65_vm0, %v359_v59 }
  0x5c   :  { %v361_v60 = vld [vmem:[#allocation2] sm:$0xff] }
  0x5d   :  { %538 = vmatmul.msk.f32.vlgmr.msra.gmra.mxu0 %vm370_vm1, %v361_v60 }
  0xda   :  { %v391_v62 = vpop.f32.mrf.mxu0 }
  0xdb   :  { %v392_v63 = vadd.f32 %v541_v61, %v391_v62 }
  0xdd   :  { %394 = vst [vmem:[#allocation5] sm:$0xff] %v392_v63 }
  0xde   :  { %405 = dma.vmem_to_hbm [thread:$0]  %s401_s17, 128, %s403_s1, [#allocation6]  }
  0xdf   :  { %580 = dma.done.wait [#allocation6], 128  }
  0xe0   :  { %581 = vsyncadd [#allocation6], 4294967168 }
  0xe1   :  { %410 = vsyncpa [#allocation6], 1 }

</bundles_post_ra>
